<compile_context>
chip_gen: v6e
topology: v6e:2x2x1
jax: 0.10.0
libtpu: 0.0.40
codegen_flags: <defaults>
</compile_context>

<pallas_src>
import functools

import jax
import jax.numpy as jnp
from jax.experimental import pallas as pl
from jax.experimental.pallas import tpu as pltpu

# Logical layer widths (from the PyTorch module).
H1 = 64
H2 = 128

# Padded (TPU-friendly) widths.
IN_PAD = 8      # state_dim (6) -> 8   (sublane multiple for w1, lane pad for x)
H1_PAD = 128    # hidden1 (64) -> 128  (full-lane vreg between layer 1 and 2)
OUT_PAD = 128   # action_dim (3) -> 128 (lane-dense output stores)


def _round_up(n: int, m: int) -> int:
    return ((n + m - 1) // m) * m


def _choose_tile(b_pad: int, tile_m: int) -> int:
    """Pick a batch tile: <= one tile of waste, >= 2 tiles when possible (v7x)."""
    tile_m = max(8, _round_up(tile_m, 8))
    if b_pad <= 2 * tile_m:
        if b_pad >= 16:
            # Split into two tiles so both v7x TensorCores get work.
            return _round_up((b_pad + 1) // 2, 8)
        return b_pad
    return tile_m


def dqn_kernel(x_ref, w1_ref, b1_ref, w2_ref, b2_ref, w3_ref, b3_ref, o_ref):
    """One batch tile: x [TILE_M, IN_PAD] bf16 -> Q [TILE_M, OUT_PAD] bf16."""
    x = x_ref[...]  # bf16

    # Layer 1: Linear(state_dim, 64) + ReLU   (padded to IN_PAD x H1_PAD)
    h1 = jnp.dot(x, w1_ref[...], preferred_element_type=jnp.float32) + b1_ref[...]
    h1 = jnp.maximum(h1.astype(jnp.bfloat16), 0.0)   # ReLU on packed bf16 vregs

    # Layer 2: Linear(64, 128) + ReLU         (padded to H1_PAD x H2)
    h2 = jnp.dot(h1, w2_ref[...], preferred_element_type=jnp.float32) + b2_ref[...]
    h2 = jnp.maximum(h2.astype(jnp.bfloat16), 0.0)

    # Layer 3: Linear(128, action_dim), no activation (padded to H2 x OUT_PAD)
    o_ref[...] = (jnp.dot(h2, w3_ref[...], preferred_element_type=jnp.float32)
                  + b3_ref[...]).astype(o_ref.dtype)


def init_params(key, state_dim, action_dim):
    """torch-style uniform(-1/sqrt(fan_in), 1/sqrt(fan_in)) init, logical shapes, f32."""
    dims = [(state_dim, H1), (H1, H2), (H2, action_dim)]
    params = {}
    for i, (fan_in, fan_out) in enumerate(dims, start=1):
        key, kw, kb = jax.random.split(key, 3)
        bound = 1.0 / jnp.sqrt(jnp.float32(fan_in))
        params[f"w{i}"] = jax.random.uniform(
            kw, (fan_in, fan_out), jnp.float32, -bound, bound)
        # biases kept 2D (1, fan_out) for clean lane-axis broadcast in the kernel
        params[f"b{i}"] = jax.random.uniform(
            kb, (1, fan_out), jnp.float32, -bound, bound)
    return params


def prepare_params(params):
    """Pad to TPU-friendly shapes and cast weights to bf16. Do this ONCE at init."""
    def pad2(a, rows, cols):
        return jnp.pad(a, ((0, rows - a.shape[0]), (0, cols - a.shape[1])))

    w1 = pad2(params["w1"], IN_PAD, H1_PAD).astype(jnp.bfloat16)
    b1 = pad2(params["b1"], 1, H1_PAD)                      # f32
    w2 = pad2(params["w2"], H1_PAD, H2).astype(jnp.bfloat16)
    b2 = pad2(params["b2"], 1, H2)                          # f32
    w3 = pad2(params["w3"], H2, OUT_PAD).astype(jnp.bfloat16)
    b3 = pad2(params["b3"], 1, OUT_PAD)                     # f32
    return (w1, b1, w2, b2, w3, b3)


@functools.partial(jax.jit, static_argnames=("action_dim", "tile_m"))
def dqn_forward(x, prepared, action_dim, tile_m=512):
    """x: [B, state_dim] float32; prepared: output of prepare_params.

    Returns [B, action_dim] float32 Q-values.
    """
    B, state_dim = x.shape
    w1, b1, w2, b2, w3, b3 = prepared

    # Batch tiling: pad batch only to a multiple of 8, pick tile adaptively
    # (waste < one tile; >= 2 tiles when b_pad >= 16 so v7x uses both TCs).
    b8 = _round_up(B, 8)
    tile = _choose_tile(b8, tile_m)
    b_pad = _round_up(b8, tile)
    grid = (b_pad // tile,)

    # Single fused pad of the bf16-cast input (rows -> b_pad, lanes -> IN_PAD).
    x_pad = jnp.pad(x.astype(jnp.bfloat16),
                    ((0, b_pad - B), (0, IN_PAD - state_dim)))

    # Weights/biases: constant index_map -> DMA'd once, resident across the grid.
    resident = lambda a: pl.BlockSpec(a.shape, lambda i: (0, 0))

    flops = 2 * b_pad * (IN_PAD * H1_PAD + H1_PAD * H2 + H2 * OUT_PAD)
    param_bytes = sum(int(a.size) * a.dtype.itemsize for a in prepared)
    bytes_accessed = b_pad * IN_PAD * 2 + b_pad * OUT_PAD * 2 + param_bytes

    out = pl.pallas_call(
        dqn_kernel,
        out_shape=jax.ShapeDtypeStruct((b_pad, OUT_PAD), jnp.bfloat16),
        grid=grid,
        in_specs=[
            pl.BlockSpec((tile, IN_PAD), lambda i: (i, 0)),
            resident(w1), resident(b1),
            resident(w2), resident(b2),
            resident(w3), resident(b3),
        ],
        out_specs=pl.BlockSpec((tile, OUT_PAD), lambda i: (i, 0)),
        compiler_params=pltpu.CompilerParams(
            dimension_semantics=("parallel",)),
        cost_estimate=pl.CostEstimate(
            flops=flops, transcendentals=0, bytes_accessed=bytes_accessed),
    )(x_pad, w1, b1, w2, b2, w3, b3)

    # Drop batch padding and output-lane padding; restore f32 for callers.
    # NOTE: padded rows contain junk (0*W1 + b1 -> ReLU -> nonzero) and must
    # never be consumed directly -- they are sliced off here.
    return out[:B, :action_dim].astype(jnp.float32)


def dqn_reference(x, params):
    """Pure-JAX f32 reference with the original (unpadded) parameters."""
    h1 = jnp.maximum(x @ params["w1"] + params["b1"], 0.0)
    h2 = jnp.maximum(h1 @ params["w2"] + params["b2"], 0.0)
    return h2 @ params["w3"] + params["b3"]


if __name__ == "__main__":
    # Acrobot-like environment: observation dim 6, 3 discrete actions.
    # Batch chosen to exercise a multi-tile grid + batch padding (300 -> 2 tiles of 152).
    state_dim, action_dim, batch = 6, 3, 300

    key = jax.random.PRNGKey(0)
    key, kx = jax.random.split(key)
    params = init_params(key, state_dim, action_dim)
    prepared = prepare_params(params)
    x = jax.random.normal(kx, (batch, state_dim), jnp.float32)

    out = dqn_forward(x, prepared, action_dim)
    out = jax.block_until_ready(out)

    ref = dqn_reference(x, params)
    assert out.shape == (batch, action_dim), out.shape
    # bf16 operands and bf16 output (f32 accumulation) -> loose tolerance vs f32 ref.
    assert jnp.allclose(out, ref, atol=5e-2, rtol=5e-2), (
        "mismatch vs JAX reference; max abs err = "
        f"{float(jnp.max(jnp.abs(out - ref)))}")

    print("KERNEL_OK")
</pallas_src>

<mosaic_0001>
module attributes {stable_mosaic.version = 11 : i64} {
  func.func @dqn_kernel(%arg0: i32, %arg1: memref<152x8xbf16, #tpu.memory_space<vmem>>, %arg2: memref<8x128xbf16, #tpu.memory_space<vmem>>, %arg3: memref<1x128xf32, #tpu.memory_space<vmem>>, %arg4: memref<128x128xbf16, #tpu.memory_space<vmem>>, %arg5: memref<1x128xf32, #tpu.memory_space<vmem>>, %arg6: memref<128x128xbf16, #tpu.memory_space<vmem>>, %arg7: memref<1x128xf32, #tpu.memory_space<vmem>>, %arg8: memref<152x128xbf16, #tpu.memory_space<vmem>>) attributes {dimension_semantics = [#tpu.dimension_semantics<parallel>], iteration_bounds = array<i64: 2>, scalar_prefetch = 0 : i64, scratch_operands = 0 : i64, tpu.core_type = #tpu.core_type<tc>, window_params = [{transform_indices = @transform_0, window_bounds = array<i64: 152, 8>}, {pipeline_mode = #tpu.pipeline_mode<synchronous>, transform_indices = @transform_1, window_bounds = array<i64: 8, 128>}, {pipeline_mode = #tpu.pipeline_mode<synchronous>, transform_indices = @transform_2, window_bounds = array<i64: 1, 128>}, {pipeline_mode = #tpu.pipeline_mode<synchronous>, transform_indices = @transform_3, window_bounds = array<i64: 128, 128>}, {pipeline_mode = #tpu.pipeline_mode<synchronous>, transform_indices = @transform_4, window_bounds = array<i64: 1, 128>}, {pipeline_mode = #tpu.pipeline_mode<synchronous>, transform_indices = @transform_5, window_bounds = array<i64: 128, 128>}, {pipeline_mode = #tpu.pipeline_mode<synchronous>, transform_indices = @transform_6, window_bounds = array<i64: 1, 128>}, {transform_indices = @transform_7, window_bounds = array<i64: 152, 128>}]} {
    %c0 = arith.constant 0 : index
    %c0_0 = arith.constant 0 : index
    %0 = vector.load %arg1[%c0, %c0_0] : memref<152x8xbf16, #tpu.memory_space<vmem>>, vector<152x8xbf16>
    %c0_1 = arith.constant 0 : index
    %c0_2 = arith.constant 0 : index
    %1 = vector.load %arg2[%c0_1, %c0_2] : memref<8x128xbf16, #tpu.memory_space<vmem>>, vector<8x128xbf16>
    %cst = arith.constant dense<0.000000e+00> : vector<152x128xf32>
    %2 = tpu.matmul %0, %1, %cst {dimension_numbers = #tpu.dot_dimension_numbers<[1], [0], [0], [1], [0, 0, 1, 1], [], []>} : vector<152x8xbf16>, vector<8x128xbf16>, vector<152x128xf32> -> vector<152x128xf32>
    %c0_3 = arith.constant 0 : index
    %c0_4 = arith.constant 0 : index
    %3 = vector.load %arg3[%c0_3, %c0_4] : memref<1x128xf32, #tpu.memory_space<vmem>>, vector<1x128xf32>
    %4 = vector.broadcast %3 : vector<1x128xf32> to vector<152x128xf32>
    %5 = arith.addf %2, %4 : vector<152x128xf32>
    %6 = arith.truncf %5 : vector<152x128xf32> to vector<152x128xbf16>
    %cst_5 = arith.constant 0.000000e+00 : bf16
    %7 = vector.broadcast %cst_5 : bf16 to vector<152x128xbf16>
    %8 = arith.maximumf %6, %7 : vector<152x128xbf16>
    %c0_6 = arith.constant 0 : index
    %c0_7 = arith.constant 0 : index
    %9 = vector.load %arg4[%c0_6, %c0_7] : memref<128x128xbf16, #tpu.memory_space<vmem>>, vector<128x128xbf16>
    %cst_8 = arith.constant dense<0.000000e+00> : vector<152x128xf32>
    %10 = tpu.matmul %8, %9, %cst_8 {dimension_numbers = #tpu.dot_dimension_numbers<[1], [0], [0], [1], [0, 0, 1, 1], [], []>} : vector<152x128xbf16>, vector<128x128xbf16>, vector<152x128xf32> -> vector<152x128xf32>
    %c0_9 = arith.constant 0 : index
    %c0_10 = arith.constant 0 : index
    %11 = vector.load %arg5[%c0_9, %c0_10] : memref<1x128xf32, #tpu.memory_space<vmem>>, vector<1x128xf32>
    %12 = vector.broadcast %11 : vector<1x128xf32> to vector<152x128xf32>
    %13 = arith.addf %10, %12 : vector<152x128xf32>
    %14 = arith.truncf %13 : vector<152x128xf32> to vector<152x128xbf16>
    %cst_11 = arith.constant 0.000000e+00 : bf16
    %15 = vector.broadcast %cst_11 : bf16 to vector<152x128xbf16>
    %16 = arith.maximumf %14, %15 : vector<152x128xbf16>
    %c0_12 = arith.constant 0 : index
    %c0_13 = arith.constant 0 : index
    %17 = vector.load %arg6[%c0_12, %c0_13] : memref<128x128xbf16, #tpu.memory_space<vmem>>, vector<128x128xbf16>
    %cst_14 = arith.constant dense<0.000000e+00> : vector<152x128xf32>
    %18 = tpu.matmul %16, %17, %cst_14 {dimension_numbers = #tpu.dot_dimension_numbers<[1], [0], [0], [1], [0, 0, 1, 1], [], []>} : vector<152x128xbf16>, vector<128x128xbf16>, vector<152x128xf32> -> vector<152x128xf32>
    %c0_15 = arith.constant 0 : index
    %c0_16 = arith.constant 0 : index
    %19 = vector.load %arg7[%c0_15, %c0_16] : memref<1x128xf32, #tpu.memory_space<vmem>>, vector<1x128xf32>
    %20 = vector.broadcast %19 : vector<1x128xf32> to vector<152x128xf32>
    %21 = arith.addf %18, %20 : vector<152x128xf32>
    %22 = arith.truncf %21 : vector<152x128xf32> to vector<152x128xbf16>
    %c0_17 = arith.constant 0 : index
    %c0_18 = arith.constant 0 : index
    %23 = vector.load %arg8[%c0_17, %c0_18] : memref<152x128xbf16, #tpu.memory_space<vmem>>, vector<152x128xbf16>
    tpu.vector_store %arg8[%c0_17, %c0_18], %22 {strides = array<i32>} : memref<152x128xbf16, #tpu.memory_space<vmem>>, vector<152x128xbf16>,
    return
  }
  func.func @transform_0(%arg0: i32) -> (i32, i32) {
    %c0_i32 = arith.constant 0 : i32
    %c0_i32_0 = arith.constant 0 : i32
    return %arg0, %c0_i32 : i32, i32
  }
  func.func @transform_1(%arg0: i32) -> (i32, i32) {
    %c0_i32 = arith.constant 0 : i32
    %c0_i32_0 = arith.constant 0 : i32
    %c0_i32_1 = arith.constant 0 : i32
    return %c0_i32, %c0_i32_0 : i32, i32
  }
  func.func @transform_2(%arg0: i32) -> (i32, i32) {
    %c0_i32 = arith.constant 0 : i32
    %c0_i32_0 = arith.constant 0 : i32
    %c0_i32_1 = arith.constant 0 : i32
    return %c0_i32, %c0_i32_0 : i32, i32
  }
  func.func @transform_3(%arg0: i32) -> (i32, i32) {
    %c0_i32 = arith.constant 0 : i32
    %c0_i32_0 = arith.constant 0 : i32
    %c0_i32_1 = arith.constant 0 : i32
    return %c0_i32, %c0_i32_0 : i32, i32
  }
  func.func @transform_4(%arg0: i32) -> (i32, i32) {
    %c0_i32 = arith.constant 0 : i32
    %c0_i32_0 = arith.constant 0 : i32
    %c0_i32_1 = arith.constant 0 : i32
    return %c0_i32, %c0_i32_0 : i32, i32
  }
  func.func @transform_5(%arg0: i32) -> (i32, i32) {
    %c0_i32 = arith.constant 0 : i32
    %c0_i32_0 = arith.constant 0 : i32
    %c0_i32_1 = arith.constant 0 : i32
    return %c0_i32, %c0_i32_0 : i32, i32
  }
  func.func @transform_6(%arg0: i32) -> (i32, i32) {
    %c0_i32 = arith.constant 0 : i32
    %c0_i32_0 = arith.constant 0 : i32
    %c0_i32_1 = arith.constant 0 : i32
    return %c0_i32, %c0_i32_0 : i32, i32
  }
  func.func @transform_7(%arg0: i32) -> (i32, i32) {
    %c0_i32 = arith.constant 0 : i32
    %c0_i32_0 = arith.constant 0 : i32
    return %arg0, %c0_i32 : i32, i32
  }
}

</mosaic_0001>

<bundles_post_ra>
// kernel: dqn_forward.1
= control target key start
LH: loop header
LB: loop body
LE: loop exit
PB: predicated region body
PF: predicated region fallthrough
CT: control target
= control target key end

     0   :  { %s1431_s24 = smov 0   ;;  %s1557_s0 = inlined_call_operand.vmem [shape: bf16[304,8], index: 0, kind: input, shape index: {}]   ;;  %s1558_s1 = inlined_call_operand.vmem [shape: bf16[8,128], index: 1, kind: input, shape index: {}]   ;;  %s1559_s2 = inlined_call_operand.vmem [shape: f32[1,128], index: 2, kind: input, shape index: {}]   ;;  %s1560_s3 = inlined_call_operand.vmem [shape: bf16[128,128], index: 3, kind: input, shape index: {}]   ;;  %s1561_s4 = inlined_call_operand.vmem [shape: f32[1,128], index: 4, kind: input, shape index: {}]   ;;  %s1562_s5 = inlined_call_operand.vmem [shape: bf16[128,128], index: 5, kind: input, shape index: {}]   ;;  %s1563_s6 = inlined_call_operand.vmem [shape: f32[1,128], index: 6, kind: input, shape index: {}]   ;;  %s1564_s7 = inlined_call_operand.vmem [shape: bf16[304,128], index: 7, kind: output, shape index: {}]  }
   0x1 LB: > { %s1063_s25 = sadd.s32 4294967295, %s1388_s24   ;;  %p1067_p0 = scmp.ge.s32.totalorder %s1388_s24, 1  ;;  %s1388_s24 = sphi %s1431_s24, %s17_s24  }
   0x2   : > { %p238_p1 = scmp.lt.s32.totalorder %s1388_s24, 3 }
   0x4   : > { %p239_p2 = pnand %p1067_p0, %p238_p1 }
   0x5   : > { %s270_s28 = smul.u32 (!%p239_p2), 19, %s1063_s25 }
   0x6   : > { %242 = sbr.rel (%p239_p2) target bundleno = 664 (0x298), region = 48 }
   0x7   : > { %p271_p3 = scmp.lt.s32.totalorder (!%p239_p2), %s270_s28, 37 }
   0xb   : > { %v302_v0 = vld [vmem:[%s1558_s1] sm:$0xf]  ;;  %vm389_vm0 = vcmask 1043456   ;;  %v1366_v1 = vld [vmem:[%s1560_s3 + $0x38] sm:$0xff]   ;;  %s1566_s28 = smov (!%p271_p3, %s270_s28), 37  ;;  %vm358_vm1 = vcmask 64512  }
   0xc   : > { %1345 = vmatprep.subr.msk.bf16.mxu0 %vm389_vm0, %v302_v0  ;;  %v391_v2 = vsel %vm389_vm0, %v302_v0, 0  ;;  %1346 = vmatprep.subr.msk.bf16.mxu1 %vm389_vm0, %v302_v0  ;;  %s1068_s8 = sshll.u32 %s1566_s28, 2  ;;  %v1367_v8 = vld [vmem:[%s1560_s3 + $0x30] sm:$0xff]   ;;  %v1368_v11 = vld [vmem:[%s1560_s3 + $0x28] sm:$0xff]   ;;  %v1369_v14 = vld [vmem:[%s1560_s3 + $0x20] sm:$0xff]   ;;  %v1390_v40 = vmov 0  }
   0xd   : > { %1250 = vmatpush3.bf16.msra.mxu0 %v391_v2  ;;  %1344 = vmatpush3.bf16.msra.mxu1 %v391_v2  ;;  %s274_s11 = scalar_lea.vmem %s1557_s0, %s1068_s8  ;;  %v1370_v15 = vld [vmem:[%s1560_s3 + $0x18] sm:$0xff]   ;;  %v1371_v17 = vld [vmem:[%s1560_s3 + $0x10] sm:$0xff]   ;;  %v1372_v18 = vld [vmem:[%s1560_s3 + $0x8] sm:$0xff]   ;;  %s1542_s10 = scalar_lea.vmem %s1564_s7, %s1068_s8 }
   0xe   : > { %1271 = vmatprep.subr.bf16.mxu1 %v1366_v1  ;;  %v1356_v3 = vld [vmem:[%s274_s11] sm:$0xff]   ;;  %v1357_v4 = vld [vmem:[%s274_s11 + $0x8] sm:$0xff]   ;;  %v1358_v5 = vld [vmem:[%s274_s11 + $0x10] sm:$0xff]  }
   0xf   : > { %1251 = vmatprep.mubr.msk.bf16.mxu0 %vm358_vm1, %v1356_v3  ;;  %v1359_v6 = vld [vmem:[%s274_s11 + $0x18] sm:$0xff]   ;;  %v1360_v7 = vld [vmem:[%s274_s11 + $0x20] sm:$0xff]   ;;  %v1365_v10 = vld [vmem:[%s274_s11 + $0x48] ss:$0 sps:$4 sm:$0xff]  }
  0x10   : > { %1252 = vmatmul.mubr.msk.bf16.vlgmr.msra.gmra.mxu0 %vm358_vm1, %v1357_v4  ;;  %v1364_v9 = vld [vmem:[%s274_s11 + $0x40] sm:$0xff]   ;;  %v1361_v12 = vld [vmem:[%s274_s11 + $0x28] sm:$0xff]   ;;  %v1362_v13 = vld [vmem:[%s274_s11 + $0x30] sm:$0xff]  }
  0x11   : > { %1255 = vmatprep.mubr.msk.bf16.mxu0 %vm358_vm1, %v1358_v5  ;;  %1267 = vmatprep.mubr.msk.bf16.mxu1 %vm358_vm1, %v1364_v9  ;;  %v1363_v16 = vld [vmem:[%s274_s11 + $0x38] sm:$0xff]   ;;  %v1373_v19 = vld [vmem:[%s1560_s3] sm:$0xff]   ;;  %v1375_v21 = vld [vmem:[%s1562_s5 + $0x30] sm:$0xff]  }
  0x12   : > { %1268 = vmatmul.mubr.msk.bf16.vlgmr.msra.gmra.mxu1 %vm358_vm1, %v1365_v10  ;;  %v1374_v20 = vld [vmem:[%s1562_s5 + $0x38] sm:$0xff]   ;;  %v1376_v22 = vld [vmem:[%s1562_s5 + $0x28] sm:$0xff]   ;;  %v1377_v23 = vld [vmem:[%s1562_s5 + $0x20] sm:$0xff]  }
  0x13   : > { %1272 = vmatpush3.bf16.msra.mxu1 %v1366_v1  ;;  %1307 = vmatprep.subr.bf16.mxu0 %v1374_v20  ;;  %v1378_v24 = vld [vmem:[%s1562_s5 + $0x18] sm:$0xff]   ;;  %v1070_v27 = vld [vmem:[%s1559_s2] ss:$0 sm:$0xff] }
  0x14   : > { %1273 = vmatprep.subr.bf16.mxu1 %v1367_v8  ;;  %1308 = vmatpush3.bf16.msra.mxu0 %v1374_v20 }
  0x15   : > { %1309 = vmatprep.subr.bf16.mxu0 %v1375_v21 }
  0x17   : > { %1274 = vmatpush3.bf16.msra.mxu1 %v1367_v8 }
  0x18   : > { %1256 = vmatmul.mubr.msk.bf16.gmra.mxu0 %vm358_vm1, %v1359_v6  ;;  %1275 = vmatprep.subr.bf16.mxu1 %v1368_v11 }
  0x19   : > { %1259 = vmatprep.mubr.msk.bf16.mxu0 %vm358_vm1, %v1360_v7  ;;  %1310 = vmatpush3.bf16.msra.mxu0 %v1375_v21 }
  0x1a   : > { %1311 = vmatprep.subr.bf16.mxu0 %v1376_v22 }
  0x1b   : > { %1276 = vmatpush3.bf16.msra.mxu1 %v1368_v11 }
  0x1c   : > { %1277 = vmatprep.subr.bf16.mxu1 %v1369_v14 }
  0x1d   : > { %1312 = vmatpush3.bf16.msra.mxu0 %v1376_v22  ;;  %v1379_v22 = vld [vmem:[%s1562_s5 + $0x10] sm:$0xff]  }
  0x1e   : > { %1313 = vmatprep.subr.bf16.mxu0 %v1377_v23 }
  0x1f   : > { %1278 = vmatpush3.bf16.msra.mxu1 %v1369_v14 }
  0x20   : > { %1260 = vmatmul.mubr.msk.bf16.gmra.mxu0 %vm358_vm1, %v1361_v12  ;;  %1279 = vmatprep.subr.bf16.mxu1 %v1370_v15 }
  0x21   : > { %1263 = vmatprep.mubr.msk.bf16.mxu0 %vm358_vm1, %v1362_v13  ;;  %1314 = vmatpush3.bf16.msra.mxu0 %v1377_v23  ;;  %v1380_v23 = vld [vmem:[%s1562_s5 + $0x8] sm:$0xff]  }
  0x22   : > { %1315 = vmatprep.subr.bf16.mxu0 %v1378_v24 }
  0x23   : > { %1280 = vmatpush3.bf16.msra.mxu1 %v1370_v15 }
  0x24   : > { %1281 = vmatprep.subr.bf16.mxu1 %v1371_v17 }
  0x25   : > { %1316 = vmatpush3.bf16.msra.mxu0 %v1378_v24  ;;  %v1381_v24 = vld [vmem:[%s1562_s5] sm:$0xff]  }
  0x26   : > { %1317 = vmatprep.subr.bf16.mxu0 %v1379_v22 }
  0x27   : > { %1282 = vmatpush3.bf16.msra.mxu1 %v1371_v17 }
  0x28   : > { %1264 = vmatmul.mubr.msk.bf16.gmra.mxu0 %vm358_vm1, %v1363_v16  ;;  %1283 = vmatprep.subr.bf16.mxu1 %v1372_v18 }
  0x29   : > { %1318 = vmatpush3.bf16.msra.mxu0 %v1379_v22 }
  0x2a   : > { %1319 = vmatprep.subr.bf16.mxu0 %v1380_v23 }
  0x2b   : > { %1284 = vmatpush3.bf16.msra.mxu1 %v1372_v18 }
  0x2c   : > { %1285 = vmatprep.subr.bf16.mxu1 %v1373_v19 }
  0x2d   : > { %1320 = vmatpush3.bf16.msra.mxu0 %v1380_v23  ;;  %v1100_v23 = vld [vmem:[%s1563_s6] ss:$0 sm:$0xff] }
  0x2e   : > { %1321 = vmatprep.subr.bf16.mxu0 %v1381_v24 }
  0x2f   : > { %1286 = vmatpush3.bf16.msra.mxu1 %v1373_v19 }
  0x31   : > { %1322 = vmatpush3.bf16.msra.mxu0 %v1381_v24 }
  0xd0   : > { %v1253_v25 = vpop.f32.mrf.mxu0 }
  0xd1   : > { %v436_v30 = vadd.f32 %v1253_v25, %v1070_v27 }
  0xd2   : > { %v427_v26 = vpop.f32.mrf.mxu0  ;;  %v1269_v36 = vpop.f32.mrf.mxu1 }
  0xd3   : > { %v428_v32 = vadd.f32 %v1070_v27, %v427_v26  ;;  %v500_v18 = vadd.f32 %v1269_v36, %v1070_v27 }
  0xd4   : > { %v1254_v28 = vpop.f32.mrf.mxu0  ;;  %v491_v39 = vpop.f32.mrf.mxu1 }
  0xd5   : > { %v439_v29 = vadd.f32 %v1254_v28, %v1070_v27  ;;  %v492_v3 = vadd.f32 %v1070_v27, %v491_v39  ;;  %v514_v20 = vpack.c.bf16 %v500_v18, %v500_v18 }
  0xd6   : > { %v430_v31 = vpop.f32.mrf.mxu0  ;;  %v1270_v44 = vpop.f32.mrf.mxu1 }
  0xd7   : > { %v431_v33 = vadd.f32 %v1070_v27, %v430_v31  ;;  %v506_v34 = vpack.c.bf16 %v439_v29, %v436_v30  ;;  %v524_v21 = vmax.bf16 %v1390_v40, %v514_v20 }
  0xd8   : > { %v1257_v35 = vpop.f32.mrf.mxu0  ;;  %v494_v0 = vpop.f32.mrf.mxu1 }
  0xd9   : > { %v505_v37 = vpack.c.bf16 %v431_v33, %v428_v32  ;;  %v516_v42 = vmax.bf16 %v1390_v40, %v506_v34  ;;  %v452_v46 = vadd.f32 %v1257_v35, %v1070_v27  ;;  %v495_v5 = vadd.f32 %v1070_v27, %v494_v0 }
  0xda   : > { %v443_v38 = vpop.f32.mrf.mxu0 }
  0xdb   : > { %v515_v41 = vmax.bf16 %v1390_v40, %v505_v37  ;;  %v444_v48 = vadd.f32 %v1070_v27, %v443_v38  ;;  %v513_v13 = vpack.c.bf16 %v495_v5, %v492_v3 }
  0xdc   : > { %v1258_v43 = vpop.f32.mrf.mxu0 }
  0xdd   : > { %v455_v45 = vadd.f32 %v1258_v43, %v1070_v27  ;;  %1287 = vmatprep.mubr.bf16.mxu1 %v515_v41  ;;  %v523_v17 = vmax.bf16 %v1390_v40, %v513_v13 }
  0xde   : > { %v446_v47 = vpop.f32.mrf.mxu0  ;;  %1288 = vmatmul.mubr.bf16.vlgmr.msra.gmra.mxu1 %v516_v42 }
  0xdf   : > { %v447_v49 = vadd.f32 %v1070_v27, %v446_v47  ;;  %v508_v50 = vpack.c.bf16 %v455_v45, %v452_v46 }
  0xe0   : > { %v1261_v51 = vpop.f32.mrf.mxu0 }
  0xe1   : > { %v507_v52 = vpack.c.bf16 %v447_v49, %v444_v48  ;;  %v518_v56 = vmax.bf16 %v1390_v40, %v508_v50  ;;  %v468_v58 = vadd.f32 %v1261_v51, %v1070_v27 }
  0xe2   : > { %v459_v53 = vpop.f32.mrf.mxu0 }
  0xe3   : > { %v517_v54 = vmax.bf16 %v1390_v40, %v507_v52  ;;  %v460_v60 = vadd.f32 %v1070_v27, %v459_v53 }
  0xe4   : > { %v1262_v55 = vpop.f32.mrf.mxu0 }
  0xe5   : > { %v471_v57 = vadd.f32 %v1262_v55, %v1070_v27  ;;  %1291 = vmatprep.mubr.bf16.mxu1 %v517_v54 }
  0xe6   : > { %v462_v59 = vpop.f32.mrf.mxu0  ;;  %1292 = vmatmul.mubr.bf16.gmra.mxu1 %v518_v56 }
  0xe7   : > { %v463_v61 = vadd.f32 %v1070_v27, %v462_v59  ;;  %v510_v62 = vpack.c.bf16 %v471_v57, %v468_v58 }
  0xe8   : > { %v1265_v63 = vpop.f32.mrf.mxu0 }
  0xe9   : > { %v509_v1 = vpack.c.bf16 %v463_v61, %v460_v60  ;;  %v520_v7 = vmax.bf16 %v1390_v40, %v510_v62  ;;  %v484_v9 = vadd.f32 %v1265_v63, %v1070_v27 }
  0xea   : > { %v475_v2 = vpop.f32.mrf.mxu0 }
  0xeb   : > { %v519_v4 = vmax.bf16 %v1390_v40, %v509_v1  ;;  %v476_v11 = vadd.f32 %v1070_v27, %v475_v2 }
  0xec   : > { %v1266_v6 = vpop.f32.mrf.mxu0 }
  0xed   : > { %v487_v8 = vadd.f32 %v1266_v6, %v1070_v27  ;;  %1295 = vmatprep.mubr.bf16.mxu1 %v519_v4 }
  0xee   : > { %v478_v10 = vpop.f32.mrf.mxu0  ;;  %1296 = vmatmul.mubr.bf16.gmra.mxu1 %v520_v7 }
  0xef   : > { %v479_v12 = vadd.f32 %v1070_v27, %v478_v10  ;;  %v512_v14 = vpack.c.bf16 %v487_v8, %v484_v9  ;;  %v1091_v27 = vld [vmem:[%s1561_s4] ss:$0 sm:$0xff] }
  0xf1   : > { %v511_v15 = vpack.c.bf16 %v479_v12, %v476_v11  ;;  %v522_v19 = vmax.bf16 %v1390_v40, %v512_v14 }
  0xf3   : > { %v521_v16 = vmax.bf16 %v1390_v40, %v511_v15 }
  0xf5   : > { %1299 = vmatprep.mubr.bf16.mxu1 %v521_v16 }
  0xf6   : > { %1300 = vmatmul.mubr.bf16.gmra.mxu1 %v522_v19 }
  0xf7   : > { %1303 = vmatprep.mubr.bf16.mxu1 %v523_v17 }
  0xfe   : > { %1304 = vmatmul.mubr.bf16.gmra.mxu1 %v524_v21 }
 0x19e   : > { %v1289_v25 = vpop.f32.mrf.mxu1 }
 0x19f   : > { %v639_v30 = vadd.f32 %v1289_v25, %v1091_v27 }
 0x1a0   : > { %v630_v26 = vpop.f32.mrf.mxu1 }
 0x1a1   : > { %v631_v32 = vadd.f32 %v1091_v27, %v630_v26 }
 0x1a2   : > { %v1290_v28 = vpop.f32.mrf.mxu1 }
 0x1a3   : > { %v642_v29 = vadd.f32 %v1290_v28, %v1091_v27 }
 0x1a4   : > { %v633_v31 = vpop.f32.mrf.mxu1 }
 0x1a5   : > { %v634_v33 = vadd.f32 %v1091_v27, %v633_v31  ;;  %v709_v34 = vpack.c.bf16 %v642_v29, %v639_v30 }
 0x1a6   : > { %v1293_v35 = vpop.f32.mrf.mxu1 }
 0x1a7   : > { %v708_v36 = vpack.c.bf16 %v634_v33, %v631_v32  ;;  %v719_v39 = vmax.bf16 %v1390_v40, %v709_v34  ;;  %v655_v43 = vadd.f32 %v1293_v35, %v1091_v27 }
 0x1a8   : > { %v646_v37 = vpop.f32.mrf.mxu1 }
 0x1a9   : > { %v718_v38 = vmax.bf16 %v1390_v40, %v708_v36  ;;  %v647_v45 = vadd.f32 %v1091_v27, %v646_v37 }
 0x1aa   : > { %v1294_v41 = vpop.f32.mrf.mxu1 }
 0x1ab   : > { %v658_v42 = vadd.f32 %v1294_v41, %v1091_v27  ;;  %1323 = vmatprep.mubr.bf16.mxu0 %v718_v38 }
 0x1ac   : > { %v649_v44 = vpop.f32.mrf.mxu1  ;;  %1324 = vmatmul.mubr.bf16.vlgmr.msra.gmra.mxu0 %v719_v39 }
 0x1ad   : > { %v650_v46 = vadd.f32 %v1091_v27, %v649_v44  ;;  %v711_v47 = vpack.c.bf16 %v658_v42, %v655_v43 }
 0x1ae   : > { %v1297_v48 = vpop.f32.mrf.mxu1 }
 0x1af   : > { %v710_v49 = vpack.c.bf16 %v650_v46, %v647_v45  ;;  %v721_v53 = vmax.bf16 %v1390_v40, %v711_v47  ;;  %v671_v55 = vadd.f32 %v1297_v48, %v1091_v27 }
 0x1b0   : > { %v662_v50 = vpop.f32.mrf.mxu1 }
 0x1b1   : > { %v720_v51 = vmax.bf16 %v1390_v40, %v710_v49  ;;  %v663_v57 = vadd.f32 %v1091_v27, %v662_v50 }
 0x1b2   : > { %v1298_v52 = vpop.f32.mrf.mxu1 }
 0x1b3   : > { %v674_v54 = vadd.f32 %v1298_v52, %v1091_v27  ;;  %1327 = vmatprep.mubr.bf16.mxu0 %v720_v51 }
 0x1b4   : > { %v665_v56 = vpop.f32.mrf.mxu1  ;;  %1328 = vmatmul.mubr.bf16.gmra.mxu0 %v721_v53 }
 0x1b5   : > { %v666_v58 = vadd.f32 %v1091_v27, %v665_v56  ;;  %v713_v59 = vpack.c.bf16 %v674_v54, %v671_v55 }
 0x1b6   : > { %v1301_v60 = vpop.f32.mrf.mxu1 }
 0x1b7   : > { %v712_v61 = vpack.c.bf16 %v666_v58, %v663_v57  ;;  %v723_v1 = vmax.bf16 %v1390_v40, %v713_v59  ;;  %v687_v3 = vadd.f32 %v1301_v60, %v1091_v27 }
 0x1b8   : > { %v678_v62 = vpop.f32.mrf.mxu1 }
 0x1b9   : > { %v722_v63 = vmax.bf16 %v1390_v40, %v712_v61  ;;  %v679_v5 = vadd.f32 %v1091_v27, %v678_v62 }
 0x1ba   : > { %v1302_v0 = vpop.f32.mrf.mxu1 }
 0x1bb   : > { %v690_v2 = vadd.f32 %v1302_v0, %v1091_v27  ;;  %1331 = vmatprep.mubr.bf16.mxu0 %v722_v63 }
 0x1bc   : > { %v681_v4 = vpop.f32.mrf.mxu1  ;;  %1332 = vmatmul.mubr.bf16.gmra.mxu0 %v723_v1 }
 0x1bd   : > { %v682_v6 = vadd.f32 %v1091_v27, %v681_v4  ;;  %v715_v7 = vpack.c.bf16 %v690_v2, %v687_v3 }
 0x1be   : > { %v1305_v8 = vpop.f32.mrf.mxu1 }
 0x1bf   : > { %v714_v9 = vpack.c.bf16 %v682_v6, %v679_v5  ;;  %v703_v12 = vadd.f32 %v1305_v8, %v1091_v27  ;;  %v725_v14 = vmax.bf16 %v1390_v40, %v715_v7 }
 0x1c0   : > { %v694_v10 = vpop.f32.mrf.mxu1 }
 0x1c1   : > { %v724_v11 = vmax.bf16 %v1390_v40, %v714_v9  ;;  %v695_v16 = vadd.f32 %v1091_v27, %v694_v10  ;;  %v717_v18 = vpack.c.bf16 %v703_v12, %v703_v12 }
 0x1c2   : > { %v1306_v13 = vpop.f32.mrf.mxu1 }
 0x1c3   : > { %1335 = vmatprep.mubr.bf16.mxu0 %v724_v11  ;;  %v727_v21 = vmax.bf16 %v1390_v40, %v717_v18 }
 0x1c4   : > { %v697_v15 = vpop.f32.mrf.mxu1  ;;  %1336 = vmatmul.mubr.bf16.gmra.mxu0 %v725_v14 }
 0x1c5   : > { %v698_v17 = vadd.f32 %v1091_v27, %v697_v15 }
 0x1c7   : > { %v716_v19 = vpack.c.bf16 %v698_v17, %v695_v16 }
 0x1c9   : > { %v726_v20 = vmax.bf16 %v1390_v40, %v716_v19 }
 0x1cb   : > { %1339 = vmatprep.mubr.bf16.mxu0 %v726_v20 }
 0x1cc   : > { %1340 = vmatmul.mubr.bf16.gmra.mxu0 %v727_v21 }
 0x26c   : > { %v1325_v22 = vpop.f32.mrf.mxu0 }
 0x26d   : > { %v842_v26 = vadd.f32 %v1325_v22, %v1100_v23 }
 0x26e   : > { %v833_v24 = vpop.f32.mrf.mxu0 }
 0x26f   : > { %v834_v27 = vadd.f32 %v1100_v23, %v833_v24 }
 0x270   : > { %v1326_v25 = vpop.f32.mrf.mxu0 }
 0x271   : > { %v845_v28 = vadd.f32 %v1326_v25, %v1100_v23 }
 0x272   : > { %v836_v40 = vpop.f32.mrf.mxu0 }
 0x273   : > { %v1157_v29 = vpack.c.bf16 %v845_v28, %v842_v26  ;;  %v837_v30 = vadd.f32 %v1100_v23, %v836_v40 }
 0x274   : > { %v1329_v31 = vpop.f32.mrf.mxu0 }
 0x275   : > { %1194 = vst [vmem:[%s1542_s10 + $0x8] sm:$0xff] %v1157_v29   ;;  %v1152_v32 = vpack.c.bf16 %v837_v30, %v834_v27  ;;  %v858_v35 = vadd.f32 %v1329_v31, %v1100_v23 }
 0x276   : > { %v849_v33 = vpop.f32.mrf.mxu0 }
 0x277   : > { %1153 = vst [vmem:[%s1542_s10] sm:$0xff] %v1152_v32   ;;  %v850_v38 = vadd.f32 %v1100_v23, %v849_v33 }
 0x278   : > { %v1330_v34 = vpop.f32.mrf.mxu0 }
 0x279   : > { %v861_v36 = vadd.f32 %v1330_v34, %v1100_v23 }
 0x27a   : > { %v852_v37 = vpop.f32.mrf.mxu0 }
 0x27b   : > { %v1167_v39 = vpack.c.bf16 %v861_v36, %v858_v35  ;;  %v853_v41 = vadd.f32 %v1100_v23, %v852_v37 }
 0x27c   : > { %v1333_v42 = vpop.f32.mrf.mxu0 }
 0x27d   : > { %1196 = vst [vmem:[%s1542_s10 + $0x18] sm:$0xff] %v1167_v39   ;;  %v1162_v43 = vpack.c.bf16 %v853_v41, %v850_v38  ;;  %v874_v46 = vadd.f32 %v1333_v42, %v1100_v23 }
 0x27e   : > { %v865_v44 = vpop.f32.mrf.mxu0 }
 0x27f   : > { %1195 = vst [vmem:[%s1542_s10 + $0x10] sm:$0xff] %v1162_v43   ;;  %v866_v49 = vadd.f32 %v1100_v23, %v865_v44 }
 0x280   : > { %v1334_v45 = vpop.f32.mrf.mxu0 }
 0x281   : > { %v877_v47 = vadd.f32 %v1334_v45, %v1100_v23 }
 0x282   : > { %v868_v48 = vpop.f32.mrf.mxu0 }
 0x283   : > { %v1177_v50 = vpack.c.bf16 %v877_v47, %v874_v46  ;;  %v869_v51 = vadd.f32 %v1100_v23, %v868_v48 }
 0x284   : > { %v1337_v52 = vpop.f32.mrf.mxu0 }
 0x285   : > { %1198 = vst [vmem:[%s1542_s10 + $0x28] sm:$0xff] %v1177_v50   ;;  %v1172_v53 = vpack.c.bf16 %v869_v51, %v866_v49  ;;  %v890_v56 = vadd.f32 %v1337_v52, %v1100_v23 }
 0x286   : > { %v881_v54 = vpop.f32.mrf.mxu0 }
 0x287   : > { %1197 = vst [vmem:[%s1542_s10 + $0x20] sm:$0xff] %v1172_v53   ;;  %v882_v59 = vadd.f32 %v1100_v23, %v881_v54 }
 0x288   : > { %v1338_v55 = vpop.f32.mrf.mxu0 }
 0x289   : > { %v893_v57 = vadd.f32 %v1338_v55, %v1100_v23 }
 0x28a   : > { %v884_v58 = vpop.f32.mrf.mxu0 }
 0x28b   : > { %v1187_v60 = vpack.c.bf16 %v893_v57, %v890_v56  ;;  %v885_v61 = vadd.f32 %v1100_v23, %v884_v58 }
 0x28c   : > { %v1341_v62 = vpop.f32.mrf.mxu0 }
 0x28d   : > { %1200 = vst [vmem:[%s1542_s10 + $0x38] sm:$0xff] %v1187_v60   ;;  %v1182_v63 = vpack.c.bf16 %v885_v61, %v882_v59  ;;  %v906_v0 = vadd.f32 %v1341_v62, %v1100_v23 }
 0x28e   : > { %v897_v1 = vpop.f32.mrf.mxu0 }
 0x28f   : > { %1199 = vst [vmem:[%s1542_s10 + $0x30] sm:$0xff] %v1182_v63   ;;  %v1148_v2 = vpack.c.bf16 %v906_v0, %v906_v0  ;;  %v898_v5 = vadd.f32 %v1100_v23, %v897_v1 }
 0x290   : > { %v1342_v3 = vpop.f32.mrf.mxu0 }
 0x291   : > { %1006 = vst [vmem:[%s1542_s10 + $0x48] sm:$0xf] %v1148_v2 }
 0x292   : > { %v900_v4 = vpop.f32.mrf.mxu0 }
 0x293   : > { %v901_v6 = vadd.f32 %v1100_v23, %v900_v4 }
 0x295   : > { %v1192_v7 = vpack.c.bf16 %v901_v6, %v898_v5 }
 0x297   : > { %1201 = vst [vmem:[%s1542_s10 + $0x40] sm:$0xff] %v1192_v7  }
 0x298 PF: > { %s17_s24 = sadd.s32 1, %s1388_s24  }
 0x299   : > { %p14_p4 = scmp.ge.s32.totalorder %s17_s24, 4  }
 0x29b   :  { %16 = sbr.rel (!%p14_p4) target bundleno = 1 (0x1), region = 78 }

</bundles_post_ra>
